<compile_context>
chip_gen: v5e
topology: v5e:2x2
jax: 0.10.0
libtpu: 0.0.40
codegen_flags: <defaults>
</compile_context>

<pallas_src>
import jax
import jax.numpy as jnp
from jax import lax
from jax.experimental import pallas as pl
from jax.experimental.pallas import tpu as pltpu


def _mlp_residual_kernel(x_ref, w1_ref, b1_ref, w2_ref, b2_ref, o_ref):
    # x_ref:  (tm, dim)   tile of rows (input dtype)
    # w1_ref: (dim, dim)  Linear1.weight in PyTorch (out, in) layout, bf16
    # b1_ref: (1, dim)    f32
    # w2_ref: (dim, dim)  Linear2.weight in PyTorch (out, in) layout, bf16
    # b2_ref: (1, dim)    f32
    x_in = x_ref[...]
    x_f32 = x_in.astype(jnp.float32)      # residual / elementwise path (f32 on VPU)
    x_op = x_in.astype(jnp.bfloat16)      # MXU operand

    # y = x @ W^T  ==  contract x axis 1 with W axis 1 (W is (out, in)).
    # The MXU handles the transposed contraction natively; no transpose copy.
    dn = (((1,), (1,)), ((), ()))
    h = lax.dot_general(x_op, w1_ref[...], dimension_numbers=dn,
                        preferred_element_type=jnp.float32)
    h = jnp.maximum(h + b1_ref[...], 0.0)                     # bias + ReLU in f32
    y = lax.dot_general(h.astype(jnp.bfloat16), w2_ref[...],
                        dimension_numbers=dn,
                        preferred_element_type=jnp.float32)
    o_ref[...] = (y + b2_ref[...] + x_f32).astype(o_ref.dtype)  # residual add


def _round_up(a, b):
    return ((a + b - 1) // b) * b


def clip_text_embedding_mlp_projector(x, w1, b1, w2, b2, *, tm=512):
    """Residual MLP projector: Linear2(ReLU(Linear1(x))) + x.

    x: (..., dim); w1, w2: (dim, dim) in PyTorch (out, in) layout; b1, b2: (dim,).
    """
    orig_shape = x.shape
    dim = orig_shape[-1]
    x2d = x.reshape(-1, dim)
    m = x2d.shape[0]

    # Lane-dense feature axis: pad dim to a multiple of 128 only if needed
    # (no-op for common CLIP dims).  Zero-padded weights/biases keep the math exact.
    dim_p = max(_round_up(dim, 128), 128)
    if dim_p != dim:
        pad_d = dim_p - dim
        x2d = jnp.pad(x2d, ((0, 0), (0, pad_d)))
        w1 = jnp.pad(w1, ((0, pad_d), (0, pad_d)))
        w2 = jnp.pad(w2, ((0, pad_d), (0, pad_d)))
        b1 = jnp.pad(b1, ((0, pad_d),))
        b2 = jnp.pad(b2, ((0, pad_d),))

    # bf16 MXU operands (f32 accumulation inside the kernel); biases stay f32.
    w1_b = w1.astype(jnp.bfloat16)
    w2_b = w2.astype(jnp.bfloat16)
    b1_r = b1.astype(jnp.float32).reshape(1, dim_p)
    b2_r = b2.astype(jnp.float32).reshape(1, dim_p)

    # Pick the row tile: big (MXU-friendly multiple of 128) but bounded by a
    # conservative VMEM budget that fits v5e/v6e and v7x's 64 MiB VMEM.
    x_bytes = x2d.dtype.itemsize
    weight_vmem = 2 * 2 * dim_p * dim_p * 2        # both bf16 weights, double-buffered
    budget = 32 * 1024 * 1024
    tm_eff = max(128, (tm // 128) * 128)
    # per-row-tile estimate: double-buffered in/out tiles + in-kernel f32/bf16 temps
    while tm_eff > 128 and weight_vmem + tm_eff * dim_p * (2 * x_bytes + 2 * 4 + 16) > budget:
        tm_eff //= 2
    tm_eff = min(tm_eff, _round_up(m, 8))          # don't tile far past the data

    grid = (pl.cdiv(m, tm_eff),)                   # no wrapper-side row padding;
                                                   # the final partial tile is masked.

    cost = pl.CostEstimate(
        flops=4 * m * dim_p * dim_p,
        transcendentals=0,
        bytes_accessed=2 * m * dim_p * x_bytes + 2 * dim_p * dim_p * 2 + 2 * dim_p * 4,
    )

    out = pl.pallas_call(
        _mlp_residual_kernel,
        out_shape=jax.ShapeDtypeStruct((m, dim_p), x.dtype),
        grid_spec=pltpu.PrefetchScalarGridSpec(
            num_scalar_prefetch=0,
            grid=grid,
            in_specs=[
                pl.BlockSpec((tm_eff, dim_p), lambda i: (i, 0)),   # x row tile
                pl.BlockSpec((dim_p, dim_p), lambda i: (0, 0)),    # W1 (resident)
                pl.BlockSpec((1, dim_p), lambda i: (0, 0)),        # b1
                pl.BlockSpec((dim_p, dim_p), lambda i: (0, 0)),    # W2 (resident)
                pl.BlockSpec((1, dim_p), lambda i: (0, 0)),        # b2
            ],
            out_specs=pl.BlockSpec((tm_eff, dim_p), lambda i: (i, 0)),
        ),
        compiler_params=pltpu.CompilerParams(
            dimension_semantics=("parallel",),
            vmem_limit_bytes=48 * 1024 * 1024,     # <= v7x physical (64 MiB)
        ),
        cost_estimate=cost,
    )(x2d, w1_b, b1_r, w2_b, b2_r)

    if dim_p != dim:
        out = out[:, :dim]
    return out.reshape(orig_shape)


if __name__ == "__main__":
    # Small shapes consistent with a text-embedding projector: (batch, seq, dim)
    batch, seq, dim = 2, 8, 32
    key = jax.random.PRNGKey(0)
    x = jax.random.normal(key, (batch, seq, dim), dtype=jnp.float32)

    # Parameters exactly as the PyTorch __init__: torch.nn.init.constant_(p, 0).
    w1 = jnp.zeros((dim, dim), dtype=jnp.float32)   # Linear1.weight (out, in)
    b1 = jnp.zeros((dim,), dtype=jnp.float32)       # Linear1.bias
    w2 = jnp.zeros((dim, dim), dtype=jnp.float32)   # Linear2.weight (out, in)
    b2 = jnp.zeros((dim,), dtype=jnp.float32)       # Linear2.bias

    out = jax.block_until_ready(
        clip_text_embedding_mlp_projector(x, w1, b1, w2, b2))

    # Pure-JAX reference of the same forward pass.
    def ref(x, w1, b1, w2, b2):
        h = jnp.maximum(x @ w1.T + b1, 0.0)
        return h @ w2.T + b2 + x

    expected = ref(x, w1, b1, w2, b2)
    assert out.shape == x.shape and out.dtype == x.dtype
    # Zero-init weights -> exact passthrough (no bf16 rounding in play).
    assert jnp.allclose(out, expected, atol=1e-6, rtol=1e-6)

    # Sanity-check the MLP path with non-zero weights.  bf16 MXU operands with
    # f32 accumulation -> tolerances loosened vs the pure-f32 reference.
    k1, k2, k3, k4 = jax.random.split(jax.random.PRNGKey(1), 4)
    w1n = jax.random.normal(k1, (dim, dim), jnp.float32) * 0.05
    b1n = jax.random.normal(k2, (dim,), jnp.float32) * 0.05
    w2n = jax.random.normal(k3, (dim, dim), jnp.float32) * 0.05
    b2n = jax.random.normal(k4, (dim,), jnp.float32) * 0.05
    out_n = jax.block_until_ready(
        clip_text_embedding_mlp_projector(x, w1n, b1n, w2n, b2n))
    assert jnp.allclose(out_n, ref(x, w1n, b1n, w2n, b2n), atol=2e-2, rtol=2e-2)

    print("KERNEL_OK")
</pallas_src>

<mosaic_0001>
module attributes {stable_mosaic.version = 11 : i64} {
  func.func @_mlp_residual_kernel(%arg0: i32, %arg1: memref<16x128xf32, #tpu.memory_space<vmem>>, %arg2: memref<128x128xbf16, #tpu.memory_space<vmem>>, %arg3: memref<1x128xf32, #tpu.memory_space<vmem>>, %arg4: memref<128x128xbf16, #tpu.memory_space<vmem>>, %arg5: memref<1x128xf32, #tpu.memory_space<vmem>>, %arg6: memref<16x128xf32, #tpu.memory_space<vmem>>) attributes {dimension_semantics = [#tpu.dimension_semantics<parallel>], iteration_bounds = array<i64: 1>, scalar_prefetch = 0 : i64, scratch_operands = 0 : i64, tpu.core_type = #tpu.core_type<tc>, window_params = [{transform_indices = @transform_0, window_bounds = array<i64: 16, 128>}, {pipeline_mode = #tpu.pipeline_mode<synchronous>, transform_indices = @transform_1, window_bounds = array<i64: 128, 128>}, {pipeline_mode = #tpu.pipeline_mode<synchronous>, transform_indices = @transform_2, window_bounds = array<i64: 1, 128>}, {pipeline_mode = #tpu.pipeline_mode<synchronous>, transform_indices = @transform_3, window_bounds = array<i64: 128, 128>}, {pipeline_mode = #tpu.pipeline_mode<synchronous>, transform_indices = @transform_4, window_bounds = array<i64: 1, 128>}, {transform_indices = @transform_5, window_bounds = array<i64: 16, 128>}]} {
    %c0 = arith.constant 0 : index
    %c0_0 = arith.constant 0 : index
    %0 = vector.load %arg1[%c0, %c0_0] : memref<16x128xf32, #tpu.memory_space<vmem>>, vector<16x128xf32>
    %1 = arith.truncf %0 : vector<16x128xf32> to vector<16x128xbf16>
    %c0_1 = arith.constant 0 : index
    %c0_2 = arith.constant 0 : index
    %2 = vector.load %arg2[%c0_1, %c0_2] : memref<128x128xbf16, #tpu.memory_space<vmem>>, vector<128x128xbf16>
    %cst = arith.constant dense<0.000000e+00> : vector<16x128xf32>
    %3 = tpu.matmul %1, %2, %cst {dimension_numbers = #tpu.dot_dimension_numbers<[1], [1], [0], [0], [0, 0, 1, 0], [], []>} : vector<16x128xbf16>, vector<128x128xbf16>, vector<16x128xf32> -> vector<16x128xf32>
    %c0_3 = arith.constant 0 : index
    %c0_4 = arith.constant 0 : index
    %4 = vector.load %arg3[%c0_3, %c0_4] : memref<1x128xf32, #tpu.memory_space<vmem>>, vector<1x128xf32>
    %5 = vector.broadcast %4 : vector<1x128xf32> to vector<16x128xf32>
    %6 = arith.addf %3, %5 : vector<16x128xf32>
    %cst_5 = arith.constant 0.000000e+00 : f32
    %7 = vector.broadcast %cst_5 : f32 to vector<16x128xf32>
    %8 = arith.maximumf %6, %7 : vector<16x128xf32>
    %9 = arith.truncf %8 : vector<16x128xf32> to vector<16x128xbf16>
    %c0_6 = arith.constant 0 : index
    %c0_7 = arith.constant 0 : index
    %10 = vector.load %arg4[%c0_6, %c0_7] : memref<128x128xbf16, #tpu.memory_space<vmem>>, vector<128x128xbf16>
    %cst_8 = arith.constant dense<0.000000e+00> : vector<16x128xf32>
    %11 = tpu.matmul %9, %10, %cst_8 {dimension_numbers = #tpu.dot_dimension_numbers<[1], [1], [0], [0], [0, 0, 1, 0], [], []>} : vector<16x128xbf16>, vector<128x128xbf16>, vector<16x128xf32> -> vector<16x128xf32>
    %c0_9 = arith.constant 0 : index
    %c0_10 = arith.constant 0 : index
    %12 = vector.load %arg5[%c0_9, %c0_10] : memref<1x128xf32, #tpu.memory_space<vmem>>, vector<1x128xf32>
    %13 = vector.broadcast %12 : vector<1x128xf32> to vector<16x128xf32>
    %14 = arith.addf %11, %13 : vector<16x128xf32>
    %15 = arith.addf %14, %0 : vector<16x128xf32>
    %c0_11 = arith.constant 0 : index
    %c0_12 = arith.constant 0 : index
    %16 = vector.load %arg6[%c0_11, %c0_12] : memref<16x128xf32, #tpu.memory_space<vmem>>, vector<16x128xf32>
    tpu.vector_store %arg6[%c0_11, %c0_12], %15 {strides = array<i32>} : memref<16x128xf32, #tpu.memory_space<vmem>>, vector<16x128xf32>,
    return
  }
  func.func @transform_0(%arg0: i32) -> (i32, i32) {
    %c0_i32 = arith.constant 0 : i32
    %c0_i32_0 = arith.constant 0 : i32
    return %arg0, %c0_i32 : i32, i32
  }
  func.func @transform_1(%arg0: i32) -> (i32, i32) {
    %c0_i32 = arith.constant 0 : i32
    %c0_i32_0 = arith.constant 0 : i32
    %c0_i32_1 = arith.constant 0 : i32
    return %c0_i32, %c0_i32_0 : i32, i32
  }
  func.func @transform_2(%arg0: i32) -> (i32, i32) {
    %c0_i32 = arith.constant 0 : i32
    %c0_i32_0 = arith.constant 0 : i32
    %c0_i32_1 = arith.constant 0 : i32
    return %c0_i32, %c0_i32_0 : i32, i32
  }
  func.func @transform_3(%arg0: i32) -> (i32, i32) {
    %c0_i32 = arith.constant 0 : i32
    %c0_i32_0 = arith.constant 0 : i32
    %c0_i32_1 = arith.constant 0 : i32
    return %c0_i32, %c0_i32_0 : i32, i32
  }
  func.func @transform_4(%arg0: i32) -> (i32, i32) {
    %c0_i32 = arith.constant 0 : i32
    %c0_i32_0 = arith.constant 0 : i32
    %c0_i32_1 = arith.constant 0 : i32
    return %c0_i32, %c0_i32_0 : i32, i32
  }
  func.func @transform_5(%arg0: i32) -> (i32, i32) {
    %c0_i32 = arith.constant 0 : i32
    %c0_i32_0 = arith.constant 0 : i32
    return %arg0, %c0_i32 : i32, i32
  }
}

</mosaic_0001>

<bundles_post_ra>
// kernel: tpu_custom_call.1
= control target key start
LH: loop header
LB: loop body
LE: loop exit
PB: predicated region body
PF: predicated region fallthrough
CT: control target
= control target key end

     0   :  { %10 = vsyncpa [#allocation3], 0  ;;  %s516_s0 = inlined_call_operand.hbm [shape: f32[16,128], index: 0, kind: input, shape index: {}]   ;;  %s517_s1 = inlined_call_operand.hbm [shape: bf16[128,128], index: 1, kind: input, shape index: {}]   ;;  %s518_s2 = inlined_call_operand.vmem [shape: f32[1,128], index: 2, kind: input, shape index: {}]   ;;  %s519_s3 = inlined_call_operand.hbm [shape: bf16[128,128], index: 3, kind: input, shape index: {}]   ;;  %s520_s4 = inlined_call_operand.vmem [shape: f32[1,128], index: 4, kind: input, shape index: {}]   ;;  %s521_s5 = inlined_call_operand.hbm [shape: f32[16,128], index: 5, kind: output, shape index: {}]  }
   0x1   :  { %11 = vsyncpa [#allocation6], 0  ;;  %s30_s20 = sshll.u32 %s517_s1, 4  ;;  %s31_s20 = int_to_ptr.hbm [resolvable:$true] %s30_s20 }
   0x2   :  { %12 = vsyncpa [#allocation4], 0  ;;  %s454_s21 = smov [#allocation5]   ;;  %s17_s25 = sshll.u32 %s516_s0, 4  ;;  %s18_s25 = int_to_ptr.hbm [resolvable:$true] %s17_s25 }
   0x3   :  { %s32_s22 = sshll.u32 %s454_s21, 4  ;;  %s455_s26 = smov 64   ;;  %s33_s22 = int_to_ptr.vmem [resolvable:$true] %s32_s22 }
   0x4   :  { %s456_s27 = smov 4   ;;  %s457_s28 = smov [#allocation2]  }
   0x5   :  { %38 = dma.hbm_to_vmem [thread:$0]  %s31_s20, 1024, %s33_s22, [#allocation6], %s455_s26, %s455_s26, %s456_s27  }
   0x6   :  { %s19_s29 = sshll.u32 %s457_s28, 4  ;;  %s458_s30 = smov 128   ;;  %s20_s29 = int_to_ptr.vmem [resolvable:$true] %s19_s29 }
   0x7   :  { %s459_s6 = smov 8   ;;  %s45_s8 = sshll.u32 %s519_s3, 4  ;;  %s46_s8 = int_to_ptr.hbm [resolvable:$true] %s45_s8 }
   0x8   :  { %25 = dma.hbm_to_vmem [thread:$0]  %s18_s25, 256, %s20_s29, [#allocation3], %s458_s30, %s458_s30, %s459_s6  }
   0x9   :  { %s460_s9 = smov [#allocation7]  }
   0xa   :  { %s47_s0 = sshll.u32 %s460_s9, 4  ;;  %s48_s0 = int_to_ptr.vmem [resolvable:$true] %s47_s0 }
   0xb   :  { %53 = dma.hbm_to_vmem [thread:$0]  %s46_s8, 1024, %s48_s0, [#allocation6], %s455_s26, %s455_s26, %s456_s27  }
   0xc   :  { %448 = dma.done.wait [#allocation3], 256  }
   0xd   :  { %449 = vsyncadd [#allocation3], 4294967040 }
   0xe   :  { %450 = dma.done.wait [#allocation6], 2048  }
   0xf   :  { %451 = vsyncadd [#allocation6], 4294965248  ;;  %v333_v0 = vld [vmem:[#allocation5 + $0x38] sm:$0xff]  ;;  %v332_v1 = vld [vmem:[#allocation5 + $0x30] sm:$0xff]  ;;  %s461_s13 = smov [#allocation8]   ;;  %s248_s16 = sshll.u32 %s521_s5, 4  ;;  %s249_s16 = int_to_ptr.hbm [resolvable:$true] %s248_s16 }
  0x10   :  { %139 = vmatpush.bf16.xpose.msra.mxu0 %v333_v0  ;;  %v331_v2 = vld [vmem:[#allocation5 + $0x28] sm:$0xff]  ;;  %v330_v3 = vld [vmem:[#allocation5 + $0x20] sm:$0xff]  ;;  %v329_v4 = vld [vmem:[#allocation5 + $0x18] sm:$0xff]  ;;  %s246_s14 = sshll.u32 %s461_s13, 4  ;;  %s247_s14 = int_to_ptr.vmem [resolvable:$true] %s246_s14 }
  0x11   :  { %v341_v5 = vld [vmem:[#allocation7 + $0x38] sm:$0xff]  ;;  %v328_v6 = vld [vmem:[#allocation5 + $0x10] sm:$0xff]  ;;  %v327_v8 = vld [vmem:[#allocation5 + $0x8] sm:$0xff] }
  0x12   :  { %224 = vmatpush.bf16.xpose.msra.mxu1 %v341_v5  ;;  %v340_v7 = vld [vmem:[#allocation7 + $0x30] sm:$0xff]  ;;  %v339_v9 = vld [vmem:[#allocation7 + $0x28] sm:$0xff]  ;;  %v326_v10 = vld [vmem:[#allocation5] sm:$0xff] }
  0x13   :  { %v338_v11 = vld [vmem:[#allocation7 + $0x20] sm:$0xff]  ;;  %v68_v12 = vld [vmem:[#allocation2] sm:$0xff]  ;;  %v69_v13 = vld [vmem:[#allocation2 + $0x8] sm:$0xff] }
  0x14   :  { %v70_v14 = vpack.c.bf16 %v69_v13, %v68_v12  ;;  %v337_v15 = vld [vmem:[#allocation7 + $0x18] sm:$0xff]  ;;  %v336_v16 = vld [vmem:[#allocation7 + $0x10] sm:$0xff]  ;;  %v335_v17 = vld [vmem:[#allocation7 + $0x8] sm:$0xff] }
  0x15   :  { %v334_v18 = vld [vmem:[#allocation7] sm:$0xff]  ;;  %v350_v20 = vld [vmem:[%s518_s2] ss:$0 sm:$0xff] }
  0x16   :  { %v351_v27 = vld [vmem:[%s520_s4] ss:$0 sm:$0xff] }
  0x18   :  { %140 = vmatpush.bf16.xpose.msra.mxu0 %v332_v1 }
  0x1a   :  { %225 = vmatpush.bf16.xpose.msra.mxu1 %v340_v7 }
  0x20   :  { %141 = vmatpush.bf16.xpose.msra.mxu0 %v331_v2 }
  0x22   :  { %226 = vmatpush.bf16.xpose.msra.mxu1 %v339_v9 }
  0x28   :  { %142 = vmatpush.bf16.xpose.msra.mxu0 %v330_v3 }
  0x2a   :  { %227 = vmatpush.bf16.xpose.msra.mxu1 %v338_v11 }
  0x30   :  { %143 = vmatpush.bf16.xpose.msra.mxu0 %v329_v4 }
  0x32   :  { %228 = vmatpush.bf16.xpose.msra.mxu1 %v337_v15 }
  0x38   :  { %144 = vmatpush.bf16.xpose.msra.mxu0 %v328_v6 }
  0x3a   :  { %229 = vmatpush.bf16.xpose.msra.mxu1 %v336_v16 }
  0x40   :  { %145 = vmatpush.bf16.xpose.msra.mxu0 %v327_v8 }
  0x42   :  { %230 = vmatpush.bf16.xpose.msra.mxu1 %v335_v17 }
  0x48   :  { %146 = vmatpush.bf16.xpose.msra.mxu0 %v326_v10 }
  0x4a   :  { %231 = vmatpush.bf16.xpose.msra.mxu1 %v334_v18 }
  0x4f   :  { %147 = vmatmul.bf16.vlgmr.msra.gmra.mxu0 %v70_v14 }
  0xcc   :  { %v148_v19 = vpop.f32.mrf.mxu0 }
  0xcd   :  { %v149_v21 = vadd.f32 %v350_v20, %v148_v19 }
  0xcf   :  { %v153_v24 = vmax.f32 %v149_v21, 0.0 }
  0xd4   :  { %v150_v22 = vpop.f32.mrf.mxu0 }
  0xd5   :  { %v151_v23 = vadd.f32 %v350_v20, %v150_v22 }
  0xd7   :  { %v154_v25 = vmax.f32 %v151_v23, 0.0 }
  0xd9   :  { %v155_v26 = vpack.c.bf16 %v154_v25, %v153_v24 }
  0xdb   :  { %232 = vmatmul.bf16.vlgmr.msra.gmra.mxu1 %v155_v26 }
 0x158   :  { %v233_v28 = vpop.f32.mrf.mxu1 }
 0x159   :  { %v234_v29 = vadd.f32 %v351_v27, %v233_v28 }
 0x15b   :  { %v238_v30 = vadd.f32 %v234_v29, %v68_v12 }
 0x15d   :  { %240 = vst [vmem:[#allocation8] sm:$0xff] %v238_v30 }
 0x160   :  { %v235_v31 = vpop.f32.mrf.mxu1 }
 0x161   :  { %v236_v32 = vadd.f32 %v351_v27, %v235_v31 }
 0x163   :  { %v239_v33 = vadd.f32 %v236_v32, %v69_v13 }
 0x165   :  { %241 = vst [vmem:[#allocation8 + $0x8] sm:$0xff] %v239_v33 }
 0x166   :  { %254 = dma.vmem_to_hbm [thread:$0]  %s247_s14, 256, %s249_s16, [#allocation4], %s458_s30, %s458_s30, %s459_s6  }
 0x167   :  { %452 = dma.done.wait [#allocation4], 256  }
 0x168   :  { %453 = vsyncadd [#allocation4], 4294967040 }
 0x169   :  { %259 = vsyncpa [#allocation3], 1 }
 0x16a   :  { %260 = vsyncpa [#allocation6], 1 }
 0x16b   :  { %261 = vsyncpa [#allocation4], 1 }

</bundles_post_ra>
